<compile_context>
chip_gen: v7x
topology: tpu7x:2x2x1
jax: 0.10.0
libtpu: 0.0.40
codegen_flags: <defaults>
</compile_context>

<pallas_src>
import functools

import jax
import jax.numpy as jnp
from jax.experimental import pallas as pl
from jax.experimental.pallas import tpu as pltpu


def _make_rnn_kernel(seq_len: int, batch: int, num_layers: int):
    """Builds the Pallas kernel body for fixed (seq_len, batch, num_layers)."""

    def kernel(*refs):
        # ---- unpack refs --------------------------------------------------
        x_ref = refs[0]                       # (T*B, I)   bf16, time-major flattened
        idx = 1
        layers = []
        for _ in range(num_layers):
            w_ih_t, w_hh_t, bias = refs[idx:idx + 3]   # bf16, bf16, f32(1,H)
            idx += 3
            layers.append((w_ih_t, w_hh_t, bias))
        w_out_t = refs[idx]                   # (H, 128)   bf16 (padded head)
        b_out = refs[idx + 1]                 # (1, 128)   f32  (padded head)
        out_ref = refs[idx + 2]               # (B, 128)   f32
        h_seq = refs[idx + 3]                 # scratch (T*B, H) f32

        T, B = seq_len, batch
        H = h_seq.shape[1]

        h = jnp.zeros((B, H), jnp.float32)
        for layer_idx, (w_ih_t, w_hh_t, bias) in enumerate(layers):
            # ---- hoisted input projection: one big (T*B, K) @ (K, H) matmul ----
            if layer_idx == 0:
                x_all = x_ref[...]                        # already bf16
            else:
                # previous layer's outputs; read whole BEFORE overwriting h_seq
                x_all = h_seq[...].astype(jnp.bfloat16)
            proj = (
                jnp.dot(x_all, w_ih_t[...], preferred_element_type=jnp.float32)
                + bias[...]                               # folded b_ih + b_hh (f32)
            )
            h_seq[...] = proj                             # f32, no reshape needed

            # ---- serial recurrence; h lives in registers, W_hh loaded once -----
            w_hh = w_hh_t[...]                            # hoisted out of the t-loop
            h = jnp.zeros((B, H), jnp.float32)            # h0 = None in torch => zeros
            last_layer = layer_idx == num_layers - 1
            for t in range(T):
                row = t * B                               # static, multiple of 8
                pre = h_seq[pl.ds(row, B), :] + jnp.dot(
                    h.astype(jnp.bfloat16), w_hh,
                    preferred_element_type=jnp.float32)
                h = jnp.tanh(pre)                         # f32 tanh (EUP)
                if not last_layer:
                    h_seq[pl.ds(row, B), :] = h           # next layer's input at step t

        # ---- final Linear on the last timestep of the last layer (lane-dense) --
        out_ref[...] = (
            jnp.dot(h.astype(jnp.bfloat16), w_out_t[...],
                    preferred_element_type=jnp.float32)
            + b_out[...]
        )

    return kernel


def prepare_params(params, num_layers, out_pad=128):
    """One-time weight prep: transpose, cast to bf16, fold biases, pad the head."""
    H = params["w_hh_0"].shape[0]
    prepped = []
    for l in range(num_layers):
        prepped.append(jnp.transpose(params[f"w_ih_{l}"]).astype(jnp.bfloat16))      # (K, H)
        prepped.append(jnp.transpose(params[f"w_hh_{l}"]).astype(jnp.bfloat16))      # (H, H)
        prepped.append(
            (params[f"b_ih_{l}"] + params[f"b_hh_{l}"]).reshape(1, H).astype(jnp.float32)
        )                                                                             # folded bias
    w_out_t = jnp.transpose(params["w_out"])                                          # (H, 10)
    n_cls = w_out_t.shape[1]
    pad = out_pad - n_cls
    prepped.append(jnp.pad(w_out_t, ((0, 0), (0, pad))).astype(jnp.bfloat16))         # (H, 128)
    prepped.append(jnp.pad(params["b_out"], (0, pad)).reshape(1, out_pad)
                   .astype(jnp.float32))                                              # (1, 128)
    return tuple(prepped)


@functools.partial(jax.jit, static_argnames=("num_layers", "num_classes"))
def rnn_net_forward(x_btI, prepped_params, num_layers, num_classes=10):
    """x_btI: (B, T, I) batch-first float32; prepped_params from prepare_params()."""
    B, T, I = x_btI.shape
    H = prepped_params[1].shape[0]           # w_hh_0^T is (H, H)
    out_pad = prepped_params[-1].shape[1]    # padded head width (128)

    # glue: time-major + flatten so every timestep is an aligned 8-sublane window;
    # cast x to bf16 once here (halves input DMA bytes, f32 accumulation in-kernel).
    x_flat = jnp.transpose(x_btI, (1, 0, 2)).reshape(T * B, I).astype(jnp.bfloat16)

    vmem = pl.BlockSpec(memory_space=pltpu.MemorySpace.VMEM)
    n_in = 1 + len(prepped_params)

    out_padded = pl.pallas_call(
        _make_rnn_kernel(T, B, num_layers),
        out_shape=jax.ShapeDtypeStruct((B, out_pad), jnp.float32),
        in_specs=[vmem] * n_in,
        out_specs=vmem,
        scratch_shapes=[
            pltpu.VMEM((T * B, H), jnp.float32),   # flat per-layer sequence buffer
        ],
        compiler_params=pltpu.CompilerParams(
            vmem_limit_bytes=32 * 1024 * 1024,     # explicit (v5e default is 16 MiB)
        ),
    )(x_flat, *prepped_params)
    return out_padded[:, :num_classes]


def init_params(key, input_size, hidden_size, num_layers, out_size=10):
    """Deterministic parameter init (uniform +/- 1/sqrt(hidden), like torch.nn.RNN)."""
    params = {}
    k = 1.0 / jnp.sqrt(jnp.float32(hidden_size))
    for l in range(num_layers):
        in_dim = input_size if l == 0 else hidden_size
        key, k1, k2, k3, k4 = jax.random.split(key, 5)
        params[f"w_ih_{l}"] = jax.random.uniform(k1, (hidden_size, in_dim), jnp.float32, -k, k)
        params[f"w_hh_{l}"] = jax.random.uniform(k2, (hidden_size, hidden_size), jnp.float32, -k, k)
        params[f"b_ih_{l}"] = jax.random.uniform(k3, (hidden_size,), jnp.float32, -k, k)
        params[f"b_hh_{l}"] = jax.random.uniform(k4, (hidden_size,), jnp.float32, -k, k)
    key, k1, k2 = jax.random.split(key, 3)
    params["w_out"] = jax.random.uniform(k1, (out_size, hidden_size), jnp.float32, -k, k)
    params["b_out"] = jax.random.uniform(k2, (out_size,), jnp.float32, -k, k)
    return params


def reference_forward(x_btI, params, num_layers):
    """Pure-JAX f32 reference matching torch.nn.RNN(tanh, batch_first) + Linear."""
    B, T, I = x_btI.shape
    H = params["w_hh_0"].shape[0]
    layer_in = x_btI
    for l in range(num_layers):
        w_ih = params[f"w_ih_{l}"]
        w_hh = params[f"w_hh_{l}"]
        b_ih = params[f"b_ih_{l}"]
        b_hh = params[f"b_hh_{l}"]
        h = jnp.zeros((B, H), jnp.float32)
        outs = []
        for t in range(T):
            h = jnp.tanh(layer_in[:, t, :] @ w_ih.T + b_ih + h @ w_hh.T + b_hh)
            outs.append(h)
        layer_in = jnp.stack(outs, axis=1)
    last = layer_in[:, -1, :]
    return last @ params["w_out"].T + params["b_out"]


if __name__ == "__main__":
    # small shapes consistent with the module: batch=8, seq=8, input=16, hidden=32, 2 layers
    batch_size, seq_len, input_size, hidden_size, num_layers = 8, 8, 16, 32, 2

    key = jax.random.PRNGKey(0)
    key, xkey, pkey = jax.random.split(key, 3)
    x = jax.random.normal(xkey, (batch_size, seq_len, input_size), jnp.float32)
    params = init_params(pkey, input_size, hidden_size, num_layers)

    # one-time weight prep (transposes + bf16 casts + folded biases + padded head)
    prepped = prepare_params(params, num_layers)

    out = rnn_net_forward(x, prepped, num_layers)
    out = jax.block_until_ready(out)

    ref = reference_forward(x, params, num_layers)
    assert out.shape == (batch_size, 10), out.shape
    # NOTE: matmul operands are bf16 (f32 accumulation); 1e-2 tolerance covers the cast.
    assert jnp.allclose(out, ref, rtol=1e-2, atol=1e-2), (
        "mismatch vs reference: max abs err = %g" % float(jnp.max(jnp.abs(out - ref)))
    )
    print("KERNEL_OK")
</pallas_src>

<mosaic_0001>
module attributes {stable_mosaic.version = 11 : i64} {
  func.func @kernel(%arg0: memref<64x16xbf16, #tpu.memory_space<vmem>>, %arg1: memref<16x32xbf16, #tpu.memory_space<vmem>>, %arg2: memref<32x32xbf16, #tpu.memory_space<vmem>>, %arg3: memref<1x32xf32, #tpu.memory_space<vmem>>, %arg4: memref<32x32xbf16, #tpu.memory_space<vmem>>, %arg5: memref<32x32xbf16, #tpu.memory_space<vmem>>, %arg6: memref<1x32xf32, #tpu.memory_space<vmem>>, %arg7: memref<32x128xbf16, #tpu.memory_space<vmem>>, %arg8: memref<1x128xf32, #tpu.memory_space<vmem>>, %arg9: memref<8x128xf32, #tpu.memory_space<vmem>>, %arg10: memref<64x32xf32, #tpu.memory_space<vmem>>) attributes {dimension_semantics = [], scalar_prefetch = 0 : i64, scratch_operands = 1 : i64, tpu.core_type = #tpu.core_type<tc>} {
    %c0 = arith.constant 0 : index
    %c0_0 = arith.constant 0 : index
    %0 = vector.load %arg0[%c0, %c0_0] : memref<64x16xbf16, #tpu.memory_space<vmem>>, vector<64x16xbf16>
    %c0_1 = arith.constant 0 : index
    %c0_2 = arith.constant 0 : index
    %1 = vector.load %arg1[%c0_1, %c0_2] : memref<16x32xbf16, #tpu.memory_space<vmem>>, vector<16x32xbf16>
    %cst = arith.constant dense<0.000000e+00> : vector<64x32xf32>
    %2 = tpu.matmul %0, %1, %cst {dimension_numbers = #tpu.dot_dimension_numbers<[1], [0], [0], [1], [0, 0, 1, 1], [], []>} : vector<64x16xbf16>, vector<16x32xbf16>, vector<64x32xf32> -> vector<64x32xf32>
    %c0_3 = arith.constant 0 : index
    %c0_4 = arith.constant 0 : index
    %3 = vector.load %arg3[%c0_3, %c0_4] : memref<1x32xf32, #tpu.memory_space<vmem>>, vector<1x32xf32>
    %4 = vector.broadcast %3 : vector<1x32xf32> to vector<64x32xf32>
    %5 = arith.addf %2, %4 : vector<64x32xf32>
    %c0_5 = arith.constant 0 : index
    %c0_6 = arith.constant 0 : index
    %6 = vector.load %arg10[%c0_5, %c0_6] : memref<64x32xf32, #tpu.memory_space<vmem>>, vector<64x32xf32>
    tpu.vector_store %arg10[%c0_5, %c0_6], %5 {strides = array<i32>} : memref<64x32xf32, #tpu.memory_space<vmem>>, vector<64x32xf32>,
    %c0_7 = arith.constant 0 : index
    %c0_8 = arith.constant 0 : index
    %7 = vector.load %arg2[%c0_7, %c0_8] : memref<32x32xbf16, #tpu.memory_space<vmem>>, vector<32x32xbf16>
    %cst_9 = arith.constant 0.000000e+00 : f32
    %8 = vector.broadcast %cst_9 : f32 to vector<8x32xf32>
    %c0_10 = arith.constant 0 : index
    %c0_11 = arith.constant 0 : index
    %9 = vector.load %arg10[%c0_10, %c0_11] : memref<64x32xf32, #tpu.memory_space<vmem>>, vector<8x32xf32>
    %10 = arith.truncf %8 : vector<8x32xf32> to vector<8x32xbf16>
    %cst_12 = arith.constant dense<0.000000e+00> : vector<8x32xf32>
    %11 = tpu.matmul %10, %7, %cst_12 {dimension_numbers = #tpu.dot_dimension_numbers<[1], [0], [0], [1], [0, 0, 1, 1], [], []>} : vector<8x32xbf16>, vector<32x32xbf16>, vector<8x32xf32> -> vector<8x32xf32>
    %12 = arith.addf %9, %11 : vector<8x32xf32>
    %13 = math.tanh %12 : vector<8x32xf32>
    %c0_13 = arith.constant 0 : index
    %c0_14 = arith.constant 0 : index
    %14 = vector.load %arg10[%c0_13, %c0_14] : memref<64x32xf32, #tpu.memory_space<vmem>>, vector<8x32xf32>
    tpu.vector_store %arg10[%c0_13, %c0_14], %13 {strides = array<i32>} : memref<64x32xf32, #tpu.memory_space<vmem>>, vector<8x32xf32>,
    %c8 = arith.constant 8 : index
    %c0_15 = arith.constant 0 : index
    %15 = vector.load %arg10[%c8, %c0_15] : memref<64x32xf32, #tpu.memory_space<vmem>>, vector<8x32xf32>
    %16 = arith.truncf %13 : vector<8x32xf32> to vector<8x32xbf16>
    %cst_16 = arith.constant dense<0.000000e+00> : vector<8x32xf32>
    %17 = tpu.matmul %16, %7, %cst_16 {dimension_numbers = #tpu.dot_dimension_numbers<[1], [0], [0], [1], [0, 0, 1, 1], [], []>} : vector<8x32xbf16>, vector<32x32xbf16>, vector<8x32xf32> -> vector<8x32xf32>
    %18 = arith.addf %15, %17 : vector<8x32xf32>
    %19 = math.tanh %18 : vector<8x32xf32>
    %c8_17 = arith.constant 8 : index
    %c0_18 = arith.constant 0 : index
    %20 = vector.load %arg10[%c8_17, %c0_18] : memref<64x32xf32, #tpu.memory_space<vmem>>, vector<8x32xf32>
    tpu.vector_store %arg10[%c8_17, %c0_18], %19 {strides = array<i32>} : memref<64x32xf32, #tpu.memory_space<vmem>>, vector<8x32xf32>,
    %c16 = arith.constant 16 : index
    %c0_19 = arith.constant 0 : index
    %21 = vector.load %arg10[%c16, %c0_19] : memref<64x32xf32, #tpu.memory_space<vmem>>, vector<8x32xf32>
    %22 = arith.truncf %19 : vector<8x32xf32> to vector<8x32xbf16>
    %cst_20 = arith.constant dense<0.000000e+00> : vector<8x32xf32>
    %23 = tpu.matmul %22, %7, %cst_20 {dimension_numbers = #tpu.dot_dimension_numbers<[1], [0], [0], [1], [0, 0, 1, 1], [], []>} : vector<8x32xbf16>, vector<32x32xbf16>, vector<8x32xf32> -> vector<8x32xf32>
    %24 = arith.addf %21, %23 : vector<8x32xf32>
    %25 = math.tanh %24 : vector<8x32xf32>
    %c16_21 = arith.constant 16 : index
    %c0_22 = arith.constant 0 : index
    %26 = vector.load %arg10[%c16_21, %c0_22] : memref<64x32xf32, #tpu.memory_space<vmem>>, vector<8x32xf32>
    tpu.vector_store %arg10[%c16_21, %c0_22], %25 {strides = array<i32>} : memref<64x32xf32, #tpu.memory_space<vmem>>, vector<8x32xf32>,
    %c24 = arith.constant 24 : index
    %c0_23 = arith.constant 0 : index
    %27 = vector.load %arg10[%c24, %c0_23] : memref<64x32xf32, #tpu.memory_space<vmem>>, vector<8x32xf32>
    %28 = arith.truncf %25 : vector<8x32xf32> to vector<8x32xbf16>
    %cst_24 = arith.constant dense<0.000000e+00> : vector<8x32xf32>
    %29 = tpu.matmul %28, %7, %cst_24 {dimension_numbers = #tpu.dot_dimension_numbers<[1], [0], [0], [1], [0, 0, 1, 1], [], []>} : vector<8x32xbf16>, vector<32x32xbf16>, vector<8x32xf32> -> vector<8x32xf32>
    %30 = arith.addf %27, %29 : vector<8x32xf32>
    %31 = math.tanh %30 : vector<8x32xf32>
    %c24_25 = arith.constant 24 : index
    %c0_26 = arith.constant 0 : index
    %32 = vector.load %arg10[%c24_25, %c0_26] : memref<64x32xf32, #tpu.memory_space<vmem>>, vector<8x32xf32>
    tpu.vector_store %arg10[%c24_25, %c0_26], %31 {strides = array<i32>} : memref<64x32xf32, #tpu.memory_space<vmem>>, vector<8x32xf32>,
    %c32 = arith.constant 32 : index
    %c0_27 = arith.constant 0 : index
    %33 = vector.load %arg10[%c32, %c0_27] : memref<64x32xf32, #tpu.memory_space<vmem>>, vector<8x32xf32>
    %34 = arith.truncf %31 : vector<8x32xf32> to vector<8x32xbf16>
    %cst_28 = arith.constant dense<0.000000e+00> : vector<8x32xf32>
    %35 = tpu.matmul %34, %7, %cst_28 {dimension_numbers = #tpu.dot_dimension_numbers<[1], [0], [0], [1], [0, 0, 1, 1], [], []>} : vector<8x32xbf16>, vector<32x32xbf16>, vector<8x32xf32> -> vector<8x32xf32>
    %36 = arith.addf %33, %35 : vector<8x32xf32>
    %37 = math.tanh %36 : vector<8x32xf32>
    %c32_29 = arith.constant 32 : index
    %c0_30 = arith.constant 0 : index
    %38 = vector.load %arg10[%c32_29, %c0_30] : memref<64x32xf32, #tpu.memory_space<vmem>>, vector<8x32xf32>
    tpu.vector_store %arg10[%c32_29, %c0_30], %37 {strides = array<i32>} : memref<64x32xf32, #tpu.memory_space<vmem>>, vector<8x32xf32>,
    %c40 = arith.constant 40 : index
    %c0_31 = arith.constant 0 : index
    %39 = vector.load %arg10[%c40, %c0_31] : memref<64x32xf32, #tpu.memory_space<vmem>>, vector<8x32xf32>
    %40 = arith.truncf %37 : vector<8x32xf32> to vector<8x32xbf16>
    %cst_32 = arith.constant dense<0.000000e+00> : vector<8x32xf32>
    %41 = tpu.matmul %40, %7, %cst_32 {dimension_numbers = #tpu.dot_dimension_numbers<[1], [0], [0], [1], [0, 0, 1, 1], [], []>} : vector<8x32xbf16>, vector<32x32xbf16>, vector<8x32xf32> -> vector<8x32xf32>
    %42 = arith.addf %39, %41 : vector<8x32xf32>
    %43 = math.tanh %42 : vector<8x32xf32>
    %c40_33 = arith.constant 40 : index
    %c0_34 = arith.constant 0 : index
    %44 = vector.load %arg10[%c40_33, %c0_34] : memref<64x32xf32, #tpu.memory_space<vmem>>, vector<8x32xf32>
    tpu.vector_store %arg10[%c40_33, %c0_34], %43 {strides = array<i32>} : memref<64x32xf32, #tpu.memory_space<vmem>>, vector<8x32xf32>,
    %c48 = arith.constant 48 : index
    %c0_35 = arith.constant 0 : index
    %45 = vector.load %arg10[%c48, %c0_35] : memref<64x32xf32, #tpu.memory_space<vmem>>, vector<8x32xf32>
    %46 = arith.truncf %43 : vector<8x32xf32> to vector<8x32xbf16>
    %cst_36 = arith.constant dense<0.000000e+00> : vector<8x32xf32>
    %47 = tpu.matmul %46, %7, %cst_36 {dimension_numbers = #tpu.dot_dimension_numbers<[1], [0], [0], [1], [0, 0, 1, 1], [], []>} : vector<8x32xbf16>, vector<32x32xbf16>, vector<8x32xf32> -> vector<8x32xf32>
    %48 = arith.addf %45, %47 : vector<8x32xf32>
    %49 = math.tanh %48 : vector<8x32xf32>
    %c48_37 = arith.constant 48 : index
    %c0_38 = arith.constant 0 : index
    %50 = vector.load %arg10[%c48_37, %c0_38] : memref<64x32xf32, #tpu.memory_space<vmem>>, vector<8x32xf32>
    tpu.vector_store %arg10[%c48_37, %c0_38], %49 {strides = array<i32>} : memref<64x32xf32, #tpu.memory_space<vmem>>, vector<8x32xf32>,
    %c56 = arith.constant 56 : index
    %c0_39 = arith.constant 0 : index
    %51 = vector.load %arg10[%c56, %c0_39] : memref<64x32xf32, #tpu.memory_space<vmem>>, vector<8x32xf32>
    %52 = arith.truncf %49 : vector<8x32xf32> to vector<8x32xbf16>
    %cst_40 = arith.constant dense<0.000000e+00> : vector<8x32xf32>
    %53 = tpu.matmul %52, %7, %cst_40 {dimension_numbers = #tpu.dot_dimension_numbers<[1], [0], [0], [1], [0, 0, 1, 1], [], []>} : vector<8x32xbf16>, vector<32x32xbf16>, vector<8x32xf32> -> vector<8x32xf32>
    %54 = arith.addf %51, %53 : vector<8x32xf32>
    %55 = math.tanh %54 : vector<8x32xf32>
    %c56_41 = arith.constant 56 : index
    %c0_42 = arith.constant 0 : index
    %56 = vector.load %arg10[%c56_41, %c0_42] : memref<64x32xf32, #tpu.memory_space<vmem>>, vector<8x32xf32>
    tpu.vector_store %arg10[%c56_41, %c0_42], %55 {strides = array<i32>} : memref<64x32xf32, #tpu.memory_space<vmem>>, vector<8x32xf32>,
    %c0_43 = arith.constant 0 : index
    %c0_44 = arith.constant 0 : index
    %57 = vector.load %arg10[%c0_43, %c0_44] : memref<64x32xf32, #tpu.memory_space<vmem>>, vector<64x32xf32>
    %58 = arith.truncf %57 : vector<64x32xf32> to vector<64x32xbf16>
    %c0_45 = arith.constant 0 : index
    %c0_46 = arith.constant 0 : index
    %59 = vector.load %arg4[%c0_45, %c0_46] : memref<32x32xbf16, #tpu.memory_space<vmem>>, vector<32x32xbf16>
    %cst_47 = arith.constant dense<0.000000e+00> : vector<64x32xf32>
    %60 = tpu.matmul %58, %59, %cst_47 {dimension_numbers = #tpu.dot_dimension_numbers<[1], [0], [0], [1], [0, 0, 1, 1], [], []>} : vector<64x32xbf16>, vector<32x32xbf16>, vector<64x32xf32> -> vector<64x32xf32>
    %c0_48 = arith.constant 0 : index
    %c0_49 = arith.constant 0 : index
    %61 = vector.load %arg6[%c0_48, %c0_49] : memref<1x32xf32, #tpu.memory_space<vmem>>, vector<1x32xf32>
    %62 = vector.broadcast %61 : vector<1x32xf32> to vector<64x32xf32>
    %63 = arith.addf %60, %62 : vector<64x32xf32>
    %c0_50 = arith.constant 0 : index
    %c0_51 = arith.constant 0 : index
    %64 = vector.load %arg10[%c0_50, %c0_51] : memref<64x32xf32, #tpu.memory_space<vmem>>, vector<64x32xf32>
    tpu.vector_store %arg10[%c0_50, %c0_51], %63 {strides = array<i32>} : memref<64x32xf32, #tpu.memory_space<vmem>>, vector<64x32xf32>,
    %c0_52 = arith.constant 0 : index
    %c0_53 = arith.constant 0 : index
    %65 = vector.load %arg5[%c0_52, %c0_53] : memref<32x32xbf16, #tpu.memory_space<vmem>>, vector<32x32xbf16>
    %cst_54 = arith.constant 0.000000e+00 : f32
    %66 = vector.broadcast %cst_54 : f32 to vector<8x32xf32>
    %c0_55 = arith.constant 0 : index
    %c0_56 = arith.constant 0 : index
    %67 = vector.load %arg10[%c0_55, %c0_56] : memref<64x32xf32, #tpu.memory_space<vmem>>, vector<8x32xf32>
    %68 = arith.truncf %66 : vector<8x32xf32> to vector<8x32xbf16>
    %cst_57 = arith.constant dense<0.000000e+00> : vector<8x32xf32>
    %69 = tpu.matmul %68, %65, %cst_57 {dimension_numbers = #tpu.dot_dimension_numbers<[1], [0], [0], [1], [0, 0, 1, 1], [], []>} : vector<8x32xbf16>, vector<32x32xbf16>, vector<8x32xf32> -> vector<8x32xf32>
    %70 = arith.addf %67, %69 : vector<8x32xf32>
    %71 = math.tanh %70 : vector<8x32xf32>
    %c8_58 = arith.constant 8 : index
    %c0_59 = arith.constant 0 : index
    %72 = vector.load %arg10[%c8_58, %c0_59] : memref<64x32xf32, #tpu.memory_space<vmem>>, vector<8x32xf32>
    %73 = arith.truncf %71 : vector<8x32xf32> to vector<8x32xbf16>
    %cst_60 = arith.constant dense<0.000000e+00> : vector<8x32xf32>
    %74 = tpu.matmul %73, %65, %cst_60 {dimension_numbers = #tpu.dot_dimension_numbers<[1], [0], [0], [1], [0, 0, 1, 1], [], []>} : vector<8x32xbf16>, vector<32x32xbf16>, vector<8x32xf32> -> vector<8x32xf32>
    %75 = arith.addf %72, %74 : vector<8x32xf32>
    %76 = math.tanh %75 : vector<8x32xf32>
    %c16_61 = arith.constant 16 : index
    %c0_62 = arith.constant 0 : index
    %77 = vector.load %arg10[%c16_61, %c0_62] : memref<64x32xf32, #tpu.memory_space<vmem>>, vector<8x32xf32>
    %78 = arith.truncf %76 : vector<8x32xf32> to vector<8x32xbf16>
    %cst_63 = arith.constant dense<0.000000e+00> : vector<8x32xf32>
    %79 = tpu.matmul %78, %65, %cst_63 {dimension_numbers = #tpu.dot_dimension_numbers<[1], [0], [0], [1], [0, 0, 1, 1], [], []>} : vector<8x32xbf16>, vector<32x32xbf16>, vector<8x32xf32> -> vector<8x32xf32>
    %80 = arith.addf %77, %79 : vector<8x32xf32>
    %81 = math.tanh %80 : vector<8x32xf32>
    %c24_64 = arith.constant 24 : index
    %c0_65 = arith.constant 0 : index
    %82 = vector.load %arg10[%c24_64, %c0_65] : memref<64x32xf32, #tpu.memory_space<vmem>>, vector<8x32xf32>
    %83 = arith.truncf %81 : vector<8x32xf32> to vector<8x32xbf16>
    %cst_66 = arith.constant dense<0.000000e+00> : vector<8x32xf32>
    %84 = tpu.matmul %83, %65, %cst_66 {dimension_numbers = #tpu.dot_dimension_numbers<[1], [0], [0], [1], [0, 0, 1, 1], [], []>} : vector<8x32xbf16>, vector<32x32xbf16>, vector<8x32xf32> -> vector<8x32xf32>
    %85 = arith.addf %82, %84 : vector<8x32xf32>
    %86 = math.tanh %85 : vector<8x32xf32>
    %c32_67 = arith.constant 32 : index
    %c0_68 = arith.constant 0 : index
    %87 = vector.load %arg10[%c32_67, %c0_68] : memref<64x32xf32, #tpu.memory_space<vmem>>, vector<8x32xf32>
    %88 = arith.truncf %86 : vector<8x32xf32> to vector<8x32xbf16>
    %cst_69 = arith.constant dense<0.000000e+00> : vector<8x32xf32>
    %89 = tpu.matmul %88, %65, %cst_69 {dimension_numbers = #tpu.dot_dimension_numbers<[1], [0], [0], [1], [0, 0, 1, 1], [], []>} : vector<8x32xbf16>, vector<32x32xbf16>, vector<8x32xf32> -> vector<8x32xf32>
    %90 = arith.addf %87, %89 : vector<8x32xf32>
    %91 = math.tanh %90 : vector<8x32xf32>
    %c40_70 = arith.constant 40 : index
    %c0_71 = arith.constant 0 : index
    %92 = vector.load %arg10[%c40_70, %c0_71] : memref<64x32xf32, #tpu.memory_space<vmem>>, vector<8x32xf32>
    %93 = arith.truncf %91 : vector<8x32xf32> to vector<8x32xbf16>
    %cst_72 = arith.constant dense<0.000000e+00> : vector<8x32xf32>
    %94 = tpu.matmul %93, %65, %cst_72 {dimension_numbers = #tpu.dot_dimension_numbers<[1], [0], [0], [1], [0, 0, 1, 1], [], []>} : vector<8x32xbf16>, vector<32x32xbf16>, vector<8x32xf32> -> vector<8x32xf32>
    %95 = arith.addf %92, %94 : vector<8x32xf32>
    %96 = math.tanh %95 : vector<8x32xf32>
    %c48_73 = arith.constant 48 : index
    %c0_74 = arith.constant 0 : index
    %97 = vector.load %arg10[%c48_73, %c0_74] : memref<64x32xf32, #tpu.memory_space<vmem>>, vector<8x32xf32>
    %98 = arith.truncf %96 : vector<8x32xf32> to vector<8x32xbf16>
    %cst_75 = arith.constant dense<0.000000e+00> : vector<8x32xf32>
    %99 = tpu.matmul %98, %65, %cst_75 {dimension_numbers = #tpu.dot_dimension_numbers<[1], [0], [0], [1], [0, 0, 1, 1], [], []>} : vector<8x32xbf16>, vector<32x32xbf16>, vector<8x32xf32> -> vector<8x32xf32>
    %100 = arith.addf %97, %99 : vector<8x32xf32>
    %101 = math.tanh %100 : vector<8x32xf32>
    %c56_76 = arith.constant 56 : index
    %c0_77 = arith.constant 0 : index
    %102 = vector.load %arg10[%c56_76, %c0_77] : memref<64x32xf32, #tpu.memory_space<vmem>>, vector<8x32xf32>
    %103 = arith.truncf %101 : vector<8x32xf32> to vector<8x32xbf16>
    %cst_78 = arith.constant dense<0.000000e+00> : vector<8x32xf32>
    %104 = tpu.matmul %103, %65, %cst_78 {dimension_numbers = #tpu.dot_dimension_numbers<[1], [0], [0], [1], [0, 0, 1, 1], [], []>} : vector<8x32xbf16>, vector<32x32xbf16>, vector<8x32xf32> -> vector<8x32xf32>
    %105 = arith.addf %102, %104 : vector<8x32xf32>
    %106 = math.tanh %105 : vector<8x32xf32>
    %107 = arith.truncf %106 : vector<8x32xf32> to vector<8x32xbf16>
    %c0_79 = arith.constant 0 : index
    %c0_80 = arith.constant 0 : index
    %108 = vector.load %arg7[%c0_79, %c0_80] : memref<32x128xbf16, #tpu.memory_space<vmem>>, vector<32x128xbf16>
    %cst_81 = arith.constant dense<0.000000e+00> : vector<8x128xf32>
    %109 = tpu.matmul %107, %108, %cst_81 {dimension_numbers = #tpu.dot_dimension_numbers<[1], [0], [0], [1], [0, 0, 1, 1], [], []>} : vector<8x32xbf16>, vector<32x128xbf16>, vector<8x128xf32> -> vector<8x128xf32>
    %c0_82 = arith.constant 0 : index
    %c0_83 = arith.constant 0 : index
    %110 = vector.load %arg8[%c0_82, %c0_83] : memref<1x128xf32, #tpu.memory_space<vmem>>, vector<1x128xf32>
    %111 = vector.broadcast %110 : vector<1x128xf32> to vector<8x128xf32>
    %112 = arith.addf %109, %111 : vector<8x128xf32>
    %c0_84 = arith.constant 0 : index
    %c0_85 = arith.constant 0 : index
    %113 = vector.load %arg9[%c0_84, %c0_85] : memref<8x128xf32, #tpu.memory_space<vmem>>, vector<8x128xf32>
    tpu.vector_store %arg9[%c0_84, %c0_85], %112 {strides = array<i32>} : memref<8x128xf32, #tpu.memory_space<vmem>>, vector<8x128xf32>,
    return
  }
}

</mosaic_0001>

<bundles_post_ra>
// kernel: rnn_net_forward.1
= control target key start
LH: loop header
LB: loop body
LE: loop exit
PB: predicated region body
PF: predicated region fallthrough
CT: control target
= control target key end

     0   :  { %vm77_vm0 = vcmask 130048   ;;  %v1485_v3 = vmov 0.0   ;;  %vm1486_vm1 = vmmov 0   ;;  %s1766_s0 = inlined_call_operand.vmem [shape: bf16[64,16], index: 0, kind: input, shape index: {}]   ;;  %s1767_s1 = inlined_call_operand.vmem [shape: bf16[16,32], index: 1, kind: input, shape index: {}]   ;;  %s1768_s2 = inlined_call_operand.vmem [shape: bf16[32,32], index: 2, kind: input, shape index: {}]   ;;  %s1769_s3 = inlined_call_operand.vmem [shape: f32[1,32], index: 3, kind: input, shape index: {}]   ;;  %s1770_s4 = inlined_call_operand.vmem [shape: bf16[32,32], index: 4, kind: input, shape index: {}]   ;;  %s1771_s5 = inlined_call_operand.vmem [shape: bf16[32,32], index: 5, kind: input, shape index: {}]   ;;  %s1772_s6 = inlined_call_operand.vmem [shape: f32[1,32], index: 6, kind: input, shape index: {}]   ;;  %s1773_s7 = inlined_call_operand.vmem [shape: bf16[32,128], index: 7, kind: input, shape index: {}]   ;;  %s1774_s8 = inlined_call_operand.vmem [shape: f32[1,128], index: 8, kind: input, shape index: {}]   ;;  %s1775_s9 = inlined_call_operand.hbm [shape: f32[8,128], index: 9, kind: output, shape index: {}]  }
   0x1   :  { %v1416_v0 = vld [vmem:[%s1767_s1] sm:$0xff]   ;;  %v1418_v2 = vld [vmem:[%s1766_s0 + $0x8] sm:$0xff]   ;;  %1264 = vmatprep.subr.bf16.mxu1 %v1485_v3  ;;  %1268 = vmatprep.mubr.msk.bf16.mxu1 %vm1486_vm1, %v1485_v3 }
   0x2   :  { %v1417_v1 = vld [vmem:[%s1766_s0] sm:$0xff]   ;;  %1254 = vmatprep.subr.bf16.mxu0 %v1416_v0  ;;  %v1558_v5 = vld [vmem:[%s1768_s2 + $0x8] sm:$0xff]  }
   0x3   :  { %1255 = vmatpush3.bf16.msra.mxu0 %v1416_v0  ;;  %1256 = vmatprep.mubr.msk.bf16.mxu0 %vm77_vm0, %v1417_v1  ;;  %v1553_v4 = vld [vmem:[%s1768_s2] sm:$0xff]  }
   0x4   :  { %1280 = vmatprep.subr.bf16.mxu0 %v1485_v3  ;;  %1265 = vmatpush3.bf16.msra.mxu1 %v1553_v4 }
   0x5   :  { %1266 = vmatprep.subr.bf16.mxu1 %v1485_v3 }
   0x6   :  { %1257 = vmatmul.mubr.msk.bf16.vlgmr.msra.gmra.mrb[0].mxu0 %vm77_vm0, %v1418_v2 }
   0x7   :  { %1281 = vmatpush3.bf16.msra.mxu0 %v1553_v4 }
   0x8   :  { %1282 = vmatprep.subr.bf16.mxu0 %v1485_v3  ;;  %1267 = vmatpush3.bf16.msra.mxu1 %v1558_v5 }
   0x9   :  { %1272 = vmatprep.subr.bf16.mxu1 %v1485_v3 }
   0xa   :  { %14 = vsyncpa [#allocation4], 0  ;;  %v1487_v6 = vmov 0   ;;  %v1153_v7 = vld [vmem:[%s1769_s3] ss:$0 sm:$0xff]  ;;  %vm155_vm2 = vcmask 261120  }
   0xb   :  { %1283 = vmatpush3.bf16.msra.mxu0 %v1558_v5  ;;  %1269 = vmatmul.mubr.bf16.vlgmr.msra.gmra.mrb[0].mxu1 %v1487_v6  ;;  %v1421_v24 = vld [vmem:[%s1766_s0 + $0x10] sm:$0xff]   ;;  %v1422_v25 = vld [vmem:[%s1766_s0 + $0x18] sm:$0xff]   ;;  %v1423_v2 = vld [vmem:[%s1770_s4] sm:$0xff]   ;;  %s1488_s13 = smov [#allocation3]  }
   0xc   :  { %1296 = vmatprep.subr.bf16.mxu0 %v1485_v3  ;;  %1273 = vmatpush3.bf16.msra.mxu1 %v1553_v4  ;;  %s1145_s14 = sshll.u32 %s1488_s13, 4  ;;  %s1146_s14 = int_to_ptr.vmem [resolvable:$true] %s1145_s14 }
   0xd   :  { %1276 = vmatprep.mubr.msk.bf16.mxu1 %vm1486_vm1, %v1485_v3  ;;  %1274 = vmatprep.subr.bf16.mxu1 %v1485_v3  ;;  %p1466_p1 = scmp.lt.s32.totalorder %s1146_s14, %s1146_s14 }
   0xe   :  { %1260 = vmatprep.mubr.msk.bf16.mxu0 %vm77_vm0, %v1421_v24  ;;  %v1661_v24 = vld [vmem:[%s1771_s5 + $0x8] sm:$0xff]  }
   0xf   :  { %1261 = vmatmul.mubr.msk.bf16.gmra.mrb[4].mxu0 %vm77_vm0, %v1422_v25 }
  0x10   :  { %1275 = vmatpush3.bf16.msra.mxu1 %v1558_v5  ;;  %1284 = vmatprep.mubr.msk.bf16.mxu0 %vm1486_vm1, %v1485_v3 }
  0x11   :  { %1288 = vmatprep.subr.bf16.mxu1 %v1485_v3 }
  0xd9   :  { %v1258_v8 = vpop.f32.mrb[0].mxu0 }
  0xda   :  { %v133_v9 = vadd.f32 %v1258_v8, %v1153_v7  ;;  %v124_v10 = vpop.f32.mrb[1].mxu0 }
  0xdb   :  { %v125_v11 = vadd.f32 %v1153_v7, %v124_v10  ;;  %v1259_v12 = vpop.f32.mrb[2].mxu0 }
  0xdc   :  { %158 = vst.msk [vmem:[#allocation2 + $0x10] sm:$0xff] %vm155_vm2, %v133_v9  ;;  %v136_v13 = vadd.f32 %v1259_v12, %v1153_v7  ;;  %v127_v14 = vpop.f32.mrb[3].mxu0 }
  0xdd   :  { %156 = vst.msk [vmem:[#allocation2] sm:$0xff] %vm155_vm2, %v125_v11  ;;  %v128_v15 = vadd.f32 %v1153_v7, %v127_v14 }
  0xde   :  { %159 = vst.msk [vmem:[#allocation2 + $0x18] sm:$0xff] %vm155_vm2, %v136_v13  ;;  %v218_v16 = vpop.f32.mrb[0].mxu1 }
  0xdf   :  { %157 = vst.msk [vmem:[#allocation2 + $0x8] sm:$0xff] %vm155_vm2, %v128_v15  ;;  %v1270_v17 = vpop.f32.mrb[1].mxu1  ;;  %v1424_v15 = vld [vmem:[%s1770_s4 + $0x8] sm:$0xff]  }
  0xe0   :  { %v221_v18 = vpop.f32.mrb[2].mxu1 }
  0xe1   :  { %v1271_v19 = vpop.f32.mrb[3].mxu1 }
  0xe2   :  { %v1262_v34 = vpop.f32.mrb[4].mxu0 }
  0xe3   :  { %v149_v35 = vadd.f32 %v1262_v34, %v1153_v7  ;;  %v140_v36 = vpop.f32.mrb[5].mxu0  ;;  %v275_v42 = vld [vmem:[#allocation2 + $0x10] sm:$0xff] }
  0xe4   :  { %v168_v20 = vld [vmem:[#allocation2] sm:$0xff]  ;;  %v141_v37 = vadd.f32 %v1153_v7, %v140_v36  ;;  %v1263_v38 = vpop.f32.mrb[6].mxu0 }
  0xe5   :  { %v224_v21 = vadd.f32 %v218_v16, %v168_v20  ;;  %162 = vst.msk [vmem:[#allocation2 + $0x30] sm:$0xff] %vm155_vm2, %v149_v35  ;;  %v152_v39 = vadd.f32 %v1263_v38, %v1153_v7  ;;  %v143_v40 = vpop.f32.mrb[7].mxu0  ;;  %v323_v50 = vld [vmem:[#allocation2 + $0x18] sm:$0xff] }
  0xe6   :  { %v227_v26 = vld [vmem:[#allocation2 + $0x8] sm:$0xff]  ;;  %160 = vst.msk [vmem:[#allocation2 + $0x20] sm:$0xff] %vm155_vm2, %v141_v37  ;;  %v144_v41 = vadd.f32 %v1153_v7, %v143_v40 }
  0xe7   :  { %1429 = vtanh.f32 %v224_v21  ;;  %163 = vst.msk [vmem:[#allocation2 + $0x38] sm:$0xff] %vm155_vm2, %v152_v39 }
  0xe8   :  { %161 = vst.msk [vmem:[#allocation2 + $0x28] sm:$0xff] %vm155_vm2, %v144_v41 }
  0xec   :  { %v467_v25 = vld [vmem:[#allocation2 + $0x30] sm:$0xff] }
  0xed   :  { %v371_v58 = vld [vmem:[#allocation2 + $0x20] sm:$0xff] }
  0xef   :  { %v419_v7 = vld [vmem:[#allocation2 + $0x28] sm:$0xff] }
  0xf1   :  { %v1430_v22 = vpop.eup %1429 }
  0xf2   :  { %226 = vst.msk [vmem:[#allocation2] sm:$0xff] %vm155_vm2, %v1430_v22  ;;  %v228_v23 = vpack.c.bf16 %v1430_v22, %v1430_v22 }
  0xf4   :  { %1277 = vmatmul.mubr.msk.bf16.vlgmr.msra.gmra.mrb[4].mxu1 %vm155_vm2, %v228_v23  ;;  %v1654_v23 = vld [vmem:[%s1771_s5] sm:$0xff]  }
  0xf5   :  { %1289 = vmatpush3.bf16.msra.mxu1 %v1553_v4  ;;  %1292 = vmatprep.mubr.msk.bf16.mxu1 %vm1486_vm1, %v1485_v3 }
  0xf6   :  { %1290 = vmatprep.subr.bf16.mxu1 %v1485_v3 }
  0xf9   :  { %1291 = vmatpush3.bf16.msra.mxu1 %v1558_v5 }
  0xfa   :  { %1304 = vmatprep.subr.bf16.mxu1 %v1485_v3 }
 0x1c7   :  { %v266_v27 = vpop.f32.mrb[4].mxu1 }
 0x1c8   :  { %v272_v28 = vadd.f32 %v266_v27, %v227_v26  ;;  %v1278_v29 = vpop.f32.mrb[5].mxu1 }
 0x1c9   :  { %v269_v30 = vpop.f32.mrb[6].mxu1 }
 0x1ca   :  { %1431 = vtanh.f32 %v272_v28  ;;  %v1279_v31 = vpop.f32.mrb[7].mxu1 }
 0x1cb   :  { %v1668_v31 = vld [vmem:[%s1772_s6] ss:$0 sm:$0xff] }
 0x1d4   :  { %v1432_v32 = vpop.eup %1431 }
 0x1d5   :  { %274 = vst.msk [vmem:[#allocation2 + $0x8] sm:$0xff] %vm155_vm2, %v1432_v32  ;;  %v276_v33 = vpack.c.bf16 %v1432_v32, %v1432_v32 }
 0x1d7   :  { %1285 = vmatmul.mubr.msk.bf16.vlgmr.msra.gmra.mrb[8].mxu0 %vm155_vm2, %v276_v33 }
 0x1d8   :  { %1297 = vmatpush3.bf16.msra.mxu0 %v1553_v4  ;;  %1300 = vmatprep.mubr.msk.bf16.mxu0 %vm1486_vm1, %v1485_v3 }
 0x1d9   :  { %1298 = vmatprep.subr.bf16.mxu0 %v1485_v3 }
 0x1dc   :  { %1299 = vmatpush3.bf16.msra.mxu0 %v1558_v5  ;;  %v564_v12 = vld [vmem:[#allocation2 + $0x8] sm:$0xff] }
 0x1dd   :  { %1312 = vmatprep.subr.bf16.mxu0 %v1485_v3 }
 0x2aa   :  { %v314_v43 = vpop.f32.mrb[8].mxu0 }
 0x2ab   :  { %v320_v44 = vadd.f32 %v314_v43, %v275_v42  ;;  %v1286_v45 = vpop.f32.mrb[9].mxu0  ;;  %v515_v42 = vld [vmem:[#allocation2 + $0x38] sm:$0xff] }
 0x2ac   :  { %v317_v46 = vpop.f32.mrb[10].mxu0 }
 0x2ad   :  { %1433 = vtanh.f32 %v320_v44  ;;  %v1287_v47 = vpop.f32.mrb[11].mxu0 }
 0x2b7   :  { %v1434_v48 = vpop.eup %1433 }
 0x2b8   :  { %322 = vst.msk [vmem:[#allocation2 + $0x10] sm:$0xff] %vm155_vm2, %v1434_v48  ;;  %v324_v49 = vpack.c.bf16 %v1434_v48, %v1434_v48 }
 0x2ba   :  { %1293 = vmatmul.mubr.msk.bf16.vlgmr.msra.gmra.mrb[8].mxu1 %vm155_vm2, %v324_v49 }
 0x2bb   :  { %1305 = vmatpush3.bf16.msra.mxu1 %v1553_v4  ;;  %1308 = vmatprep.mubr.msk.bf16.mxu1 %vm1486_vm1, %v1485_v3 }
 0x2bc   :  { %1306 = vmatprep.subr.bf16.mxu1 %v1485_v3 }
 0x2bf   :  { %1307 = vmatpush3.bf16.msra.mxu1 %v1558_v5  ;;  %v565_v18 = vld [vmem:[#allocation2 + $0x10] sm:$0xff] }
 0x2c0   :  { %1320 = vmatprep.subr.bf16.mxu1 %v1485_v3 }
 0x38d   :  { %v362_v51 = vpop.f32.mrb[8].mxu1 }
 0x38e   :  { %v368_v52 = vadd.f32 %v362_v51, %v323_v50  ;;  %v1294_v53 = vpop.f32.mrb[9].mxu1 }
 0x38f   :  { %v365_v54 = vpop.f32.mrb[10].mxu1 }
 0x390   :  { %1435 = vtanh.f32 %v368_v52  ;;  %v1295_v55 = vpop.f32.mrb[11].mxu1 }
 0x39a   :  { %v1436_v56 = vpop.eup %1435 }
 0x39b   :  { %370 = vst.msk [vmem:[#allocation2 + $0x18] sm:$0xff] %vm155_vm2, %v1436_v56  ;;  %v372_v57 = vpack.c.bf16 %v1436_v56, %v1436_v56 }
 0x39d   :  { %1301 = vmatmul.mubr.msk.bf16.vlgmr.msra.gmra.mrb[12].mxu0 %vm155_vm2, %v372_v57 }
 0x39e   :  { %1313 = vmatpush3.bf16.msra.mxu0 %v1553_v4  ;;  %1316 = vmatprep.mubr.msk.bf16.mxu0 %vm1486_vm1, %v1485_v3 }
 0x39f   :  { %1314 = vmatprep.subr.bf16.mxu0 %v1485_v3 }
 0x3a2   :  { %1315 = vmatpush3.bf16.msra.mxu0 %v1558_v5  ;;  %v566_v17 = vld [vmem:[#allocation2 + $0x18] sm:$0xff] }
 0x3a3   :  { %1328 = vmatprep.subr.bf16.mxu0 %v1423_v2  ;;  %v572_v21 = vpack.c.bf16 %v566_v17, %v565_v18 }
 0x470   :  { %v410_v59 = vpop.f32.mrb[12].mxu0 }
 0x471   :  { %v416_v60 = vadd.f32 %v410_v59, %v371_v58  ;;  %v1302_v61 = vpop.f32.mrb[13].mxu0 }
 0x472   :  { %v413_v62 = vpop.f32.mrb[14].mxu0 }
 0x473   :  { %1437 = vtanh.f32 %v416_v60  ;;  %v1303_v63 = vpop.f32.mrb[15].mxu0 }
 0x47d   :  { %v1438_v0 = vpop.eup %1437 }
 0x47e   :  { %418 = vst.msk [vmem:[#allocation2 + $0x20] sm:$0xff] %vm155_vm2, %v1438_v0  ;;  %v420_v1 = vpack.c.bf16 %v1438_v0, %v1438_v0 }
 0x480   :  { %1309 = vmatmul.mubr.msk.bf16.vlgmr.msra.gmra.mrb[12].mxu1 %vm155_vm2, %v420_v1 }
 0x481   :  { %1321 = vmatpush3.bf16.msra.mxu1 %v1553_v4  ;;  %1324 = vmatprep.mubr.msk.bf16.mxu1 %vm1486_vm1, %v1485_v3 }
 0x482   :  { %1322 = vmatprep.subr.bf16.mxu1 %v1485_v3 }
 0x485   :  { %1323 = vmatpush3.bf16.msra.mxu1 %v1558_v5  ;;  %v563_v5 = vld [vmem:[#allocation2] sm:$0xff] }
 0x486   :  { %1340 = vmatprep.subr.bf16.mxu1 %v1485_v3  ;;  %v571_v16 = vpack.c.bf16 %v564_v12, %v563_v5  ;;  %v567_v19 = vld [vmem:[#allocation2 + $0x20] sm:$0xff] }
 0x553   :  { %v458_v8 = vpop.f32.mrb[12].mxu1 }
 0x554   :  { %v464_v9 = vadd.f32 %v458_v8, %v419_v7  ;;  %v1310_v10 = vpop.f32.mrb[13].mxu1 }
 0x555   :  { %v461_v11 = vpop.f32.mrb[14].mxu1 }
 0x556   :  { %1439 = vtanh.f32 %v464_v9  ;;  %v1311_v4 = vpop.f32.mrb[15].mxu1 }
 0x560   :  { %v1440_v13 = vpop.eup %1439 }
 0x561   :  { %466 = vst.msk [vmem:[#allocation2 + $0x28] sm:$0xff] %vm155_vm2, %v1440_v13  ;;  %v468_v14 = vpack.c.bf16 %v1440_v13, %v1440_v13 }
 0x563   :  { %1317 = vmatmul.mubr.msk.bf16.vlgmr.msra.gmra.mrb[16].mxu0 %vm155_vm2, %v468_v14 }
 0x564   :  { %1329 = vmatpush3.bf16.msra.mxu0 %v1423_v2  ;;  %1332 = vmatprep.mubr.msk.bf16.mxu0 %vm155_vm2, %v571_v16 }
 0x565   :  { %1330 = vmatprep.subr.bf16.mxu0 %v1424_v15 }
 0x568   :  { %1331 = vmatpush3.bf16.msra.mxu0 %v1424_v15  ;;  %v568_v20 = vld [vmem:[#allocation2 + $0x28] sm:$0xff] }
 0x569   :  { %v573_v22 = vpack.c.bf16 %v568_v20, %v567_v19  ;;  %1356 = vmatprep.subr.bf16.mxu0 %v1485_v3 }
 0x56b   :  { %1333 = vmatmul.mubr.msk.bf16.vlgmr.msra.gmra.mrb[20].mxu0 %vm155_vm2, %v572_v21 }
 0x56c   :  { %1336 = vmatprep.mubr.msk.bf16.mxu0 %vm155_vm2, %v573_v22  ;;  %1357 = vmatpush3.bf16.msra.mxu0 %v1654_v23 }
 0x56d   :  { %1358 = vmatprep.subr.bf16.mxu0 %v1485_v3 }
 0x570   :  { %1359 = vmatpush3.bf16.msra.mxu0 %v1661_v24 }
 0x571   :  { %1372 = vmatprep.subr.bf16.mxu0 %v1485_v3 }
 0x636   :  { %v506_v26 = vpop.f32.mrb[16].mxu0 }
 0x637   :  { %v512_v27 = vadd.f32 %v506_v26, %v467_v25  ;;  %v1318_v28 = vpop.f32.mrb[17].mxu0 }
 0x638   :  { %v509_v29 = vpop.f32.mrb[18].mxu0 }
 0x639   :  { %1441 = vtanh.f32 %v512_v27  ;;  %v1319_v30 = vpop.f32.mrb[19].mxu0 }
 0x63e   :  { %v1334_v32 = vpop.f32.mrb[20].mxu0 }
 0x63f   :  { %v653_v33 = vadd.f32 %v1334_v32, %v1668_v31  ;;  %v644_v34 = vpop.f32.mrb[21].mxu0 }
 0x640   :  { %v645_v35 = vadd.f32 %v1668_v31, %v644_v34  ;;  %v1335_v36 = vpop.f32.mrb[22].mxu0 }
 0x641   :  { %677 = vst.msk [vmem:[#allocation2 + $0x10] sm:$0xff] %vm155_vm2, %v653_v33  ;;  %v656_v37 = vadd.f32 %v1335_v36, %v1668_v31  ;;  %v647_v38 = vpop.f32.mrb[23].mxu0 }
 0x642   :  { %675 = vst.msk [vmem:[#allocation2] sm:$0xff] %vm155_vm2, %v645_v35  ;;  %v648_v39 = vadd.f32 %v1668_v31, %v647_v38 }
 0x643   :  { %v1442_v40 = vpop.eup %1441  ;;  %678 = vst.msk [vmem:[#allocation2 + $0x18] sm:$0xff] %vm155_vm2, %v656_v37 }
 0x644   :  { %514 = vst.msk [vmem:[#allocation2 + $0x30] sm:$0xff] %vm155_vm2, %v1442_v40  ;;  %676 = vst.msk [vmem:[#allocation2 + $0x8] sm:$0xff] %vm155_vm2, %v648_v39  ;;  %v516_v41 = vpack.c.bf16 %v1442_v40, %v1442_v40 }
 0x646   :  { %1325 = vmatmul.mubr.msk.bf16.vlgmr.msra.gmra.mrb[16].mxu1 %vm155_vm2, %v516_v41 }
 0x647   :  { %1341 = vmatpush3.bf16.msra.mxu1 %v1654_v23  ;;  %1344 = vmatprep.mubr.msk.bf16.mxu1 %vm1486_vm1, %v1485_v3 }
 0x648   :  { %1342 = vmatprep.subr.bf16.mxu1 %v1485_v3  ;;  %v789_v14 = vld [vmem:[#allocation2 + $0x10] sm:$0xff] }
 0x649   :  { %v687_v48 = vld [vmem:[#allocation2] sm:$0xff] }
 0x64a   :  { %v836_v21 = vld [vmem:[#allocation2 + $0x18] sm:$0xff] }
 0x64b   :  { %1343 = vmatpush3.bf16.msra.mxu1 %v1661_v24  ;;  %v569_v55 = vld [vmem:[#allocation2 + $0x30] sm:$0xff]  ;;  %v742_v60 = vld [vmem:[#allocation2 + $0x8] sm:$0xff] }
 0x64c   :  { %1348 = vmatprep.subr.bf16.mxu1 %v1485_v3 }
 0x64e   :  { %1345 = vmatmul.mubr.bf16.vlgmr.msra.gmra.mrb[20].mxu1 %v1487_v6 }
 0x64f   :  { %1349 = vmatpush3.bf16.msra.mxu1 %v1654_v23  ;;  %1352 = vmatprep.mubr.msk.bf16.mxu1 %vm1486_vm1, %v1485_v3 }
 0x650   :  { %1350 = vmatprep.subr.bf16.mxu1 %v1485_v3 }
 0x653   :  { %1351 = vmatpush3.bf16.msra.mxu1 %v1661_v24 }
 0x654   :  { %1364 = vmatprep.subr.bf16.mxu1 %v1485_v3 }
 0x719   :  { %v554_v43 = vpop.f32.mrb[16].mxu1 }
 0x71a   :  { %v560_v44 = vadd.f32 %v554_v43, %v515_v42  ;;  %v1326_v45 = vpop.f32.mrb[17].mxu1 }
 0x71b   :  { %v557_v46 = vpop.f32.mrb[18].mxu1 }
 0x71c   :  { %1443 = vtanh.f32 %v560_v44  ;;  %v1327_v47 = vpop.f32.mrb[19].mxu1 }
 0x721   :  { %v734_v6 = vpop.f32.mrb[20].mxu1 }
 0x722   :  { %v740_v49 = vadd.f32 %v734_v6, %v687_v48  ;;  %v1346_v50 = vpop.f32.mrb[21].mxu1 }
 0x723   :  { %v737_v51 = vpop.f32.mrb[22].mxu1 }
 0x724   :  { %1445 = vtanh.f32 %v740_v49  ;;  %v1347_v52 = vpop.f32.mrb[23].mxu1 }
 0x725   :  { %v1427_v52 = vld [vmem:[%s1773_s7] sm:$0xff]  }
 0x726   :  { %v1444_v53 = vpop.eup %1443 }
 0x727   :  { %562 = vst.msk [vmem:[#allocation2 + $0x38] sm:$0xff] %vm155_vm2, %v1444_v53  ;;  %v1428_v53 = vld [vmem:[%s1773_s7 + $0x8] sm:$0xff]   ;;  %s1461_s7 = scalar_lea.vmem %s1146_s14, 128 }
 0x728   :  { %p1462_p0 = scmp.ne.s32.totalorder %s1146_s14, %s1461_s7  ;;  %p1467_p2 = scmp.lt.s32.totalorder %s1461_s7, %s1461_s7 }
 0x72a   :  { %p1468_p3 = por %p1467_p2, %p1466_p1 }
 0x72c   :  { %p1469_p4 = pnand %p1468_p3, %p1462_p0 }
 0x72e   :  { %v1446_v54 = vpop.eup %1445  ;;  %v570_v56 = vld [vmem:[#allocation2 + $0x38] sm:$0xff] }
 0x72f   :  { %v743_v57 = vpack.c.bf16 %v1446_v54, %v1446_v54  ;;  %v574_v58 = vpack.c.bf16 %v570_v56, %v569_v55 }
 0x731   :  { %1337 = vmatmul.mubr.msk.bf16.gmra.mrb[24].mxu0 %vm155_vm2, %v574_v58  ;;  %1353 = vmatmul.mubr.msk.bf16.vlgmr.msra.gmra.mrb[24].mxu1 %vm155_vm2, %v743_v57 }
 0x732   :  { %1360 = vmatprep.mubr.msk.bf16.mxu0 %vm1486_vm1, %v1485_v3  ;;  %1365 = vmatpush3.bf16.msra.mxu1 %v1654_v23 }
 0x733   :  { %1366 = vmatprep.subr.bf16.mxu1 %v1485_v3  ;;  %1368 = vmatprep.mubr.msk.bf16.mxu1 %vm1486_vm1, %v1485_v3 }
 0x736   :  { %1367 = vmatpush3.bf16.msra.mxu1 %v1661_v24 }
 0x737   :  { %1380 = vmatprep.subr.bf16.mxu1 %v1485_v3 }
 0x804   :  { %v1338_v59 = vpop.f32.mrb[24].mxu0  ;;  %v781_v61 = vpop.f32.mrb[24].mxu1 }
 0x805   :  { %v669_v62 = vadd.f32 %v1338_v59, %v1668_v31  ;;  %v787_v63 = vadd.f32 %v781_v61, %v742_v60  ;;  %v660_v0 = vpop.f32.mrb[25].mxu0  ;;  %v1354_v1 = vpop.f32.mrb[25].mxu1 }
 0x806   :  { %v661_v2 = vadd.f32 %v1668_v31, %v660_v0  ;;  %v1339_v7 = vpop.f32.mrb[26].mxu0  ;;  %v784_v8 = vpop.f32.mrb[26].mxu1 }
 0x807   :  { %681 = vst.msk [vmem:[#allocation2 + $0x30] sm:$0xff] %vm155_vm2, %v669_v62  ;;  %1447 = vtanh.f32 %v787_v63  ;;  %v672_v9 = vadd.f32 %v1339_v7, %v1668_v31  ;;  %v663_v10 = vpop.f32.mrb[27].mxu0  ;;  %v1355_v11 = vpop.f32.mrb[27].mxu1 }
 0x808   :  { %679 = vst.msk [vmem:[#allocation2 + $0x20] sm:$0xff] %vm155_vm2, %v661_v2  ;;  %v664_v4 = vadd.f32 %v1668_v31, %v663_v10 }
 0x809   :  { %682 = vst.msk [vmem:[#allocation2 + $0x38] sm:$0xff] %vm155_vm2, %v672_v9 }
 0x80a   :  { %680 = vst.msk [vmem:[#allocation2 + $0x28] sm:$0xff] %vm155_vm2, %v664_v4 }
 0x80f   :  { %v883_v31 = vld [vmem:[#allocation2 + $0x20] sm:$0xff] }
 0x810   :  { %v1024_v54 = vld [vmem:[#allocation2 + $0x38] sm:$0xff] }
 0x811   :  { %v1448_v12 = vpop.eup %1447  ;;  %v930_v39 = vld [vmem:[#allocation2 + $0x28] sm:$0xff] }
 0x812   :  { %v790_v13 = vpack.c.bf16 %v1448_v12, %v1448_v12 }
 0x814   :  { %1361 = vmatmul.mubr.msk.bf16.vlgmr.msra.gmra.mrb[28].mxu0 %vm155_vm2, %v790_v13 }
 0x815   :  { %1373 = vmatpush3.bf16.msra.mxu0 %v1654_v23  ;;  %1376 = vmatprep.mubr.msk.bf16.mxu0 %vm1486_vm1, %v1485_v3 }
 0x816   :  { %1374 = vmatprep.subr.bf16.mxu0 %v1485_v3 }
 0x819   :  { %1375 = vmatpush3.bf16.msra.mxu0 %v1661_v24 }
 0x81a   :  { %1388 = vmatprep.subr.bf16.mxu0 %v1485_v3 }
 0x8e7   :  { %v828_v5 = vpop.f32.mrb[28].mxu0 }
 0x8e8   :  { %v834_v15 = vadd.f32 %v828_v5, %v789_v14  ;;  %v1362_v16 = vpop.f32.mrb[29].mxu0 }
 0x8e9   :  { %v831_v17 = vpop.f32.mrb[30].mxu0 }
 0x8ea   :  { %1449 = vtanh.f32 %v834_v15  ;;  %v1363_v18 = vpop.f32.mrb[31].mxu0 }
 0x8f4   :  { %v1450_v19 = vpop.eup %1449 }
 0x8f5   :  { %v837_v20 = vpack.c.bf16 %v1450_v19, %v1450_v19 }
 0x8f7   :  { %1369 = vmatmul.mubr.msk.bf16.vlgmr.msra.gmra.mrb[28].mxu1 %vm155_vm2, %v837_v20 }
 0x8f8   :  { %1381 = vmatpush3.bf16.msra.mxu1 %v1654_v23  ;;  %1384 = vmatprep.mubr.msk.bf16.mxu1 %vm1486_vm1, %v1485_v3 }
 0x8f9   :  { %1382 = vmatprep.subr.bf16.mxu1 %v1485_v3 }
 0x8fc   :  { %1383 = vmatpush3.bf16.msra.mxu1 %v1661_v24 }
 0x8fd   :  { %1396 = vmatprep.subr.bf16.mxu1 %v1485_v3 }
 0x9ca   :  { %v875_v22 = vpop.f32.mrb[28].mxu1 }
 0x9cb   :  { %v881_v25 = vadd.f32 %v875_v22, %v836_v21  ;;  %v1370_v26 = vpop.f32.mrb[29].mxu1 }
 0x9cc   :  { %v878_v27 = vpop.f32.mrb[30].mxu1 }
 0x9cd   :  { %1451 = vtanh.f32 %v881_v25  ;;  %v1371_v28 = vpop.f32.mrb[31].mxu1 }
 0x9d7   :  { %v1452_v29 = vpop.eup %1451 }
 0x9d8   :  { %v884_v30 = vpack.c.bf16 %v1452_v29, %v1452_v29 }
 0x9da   :  { %1377 = vmatmul.mubr.msk.bf16.vlgmr.msra.gmra.mrb[32].mxu0 %vm155_vm2, %v884_v30 }
 0x9db   :  { %1389 = vmatpush3.bf16.msra.mxu0 %v1654_v23  ;;  %1392 = vmatprep.mubr.msk.bf16.mxu0 %vm1486_vm1, %v1485_v3 }
 0x9dc   :  { %1390 = vmatprep.subr.bf16.mxu0 %v1485_v3 }
 0x9df   :  { %1391 = vmatpush3.bf16.msra.mxu0 %v1661_v24 }
 0x9e0   :  { %1404 = vmatprep.subr.bf16.mxu0 %v1485_v3 }
 0xaad   :  { %v922_v32 = vpop.f32.mrb[32].mxu0 }
 0xaae   :  { %v928_v33 = vadd.f32 %v922_v32, %v883_v31  ;;  %v1378_v34 = vpop.f32.mrb[33].mxu0 }
 0xaaf   :  { %v925_v35 = vpop.f32.mrb[34].mxu0 }
 0xab0   :  { %1453 = vtanh.f32 %v928_v33  ;;  %v1379_v36 = vpop.f32.mrb[35].mxu0 }
 0xaba   :  { %v1454_v37 = vpop.eup %1453 }
 0xabb   :  { %v931_v38 = vpack.c.bf16 %v1454_v37, %v1454_v37 }
 0xabd   :  { %1385 = vmatmul.mubr.msk.bf16.vlgmr.msra.gmra.mrb[32].mxu1 %vm155_vm2, %v931_v38 }
 0xabe   :  { %1397 = vmatpush3.bf16.msra.mxu1 %v1654_v23  ;;  %1400 = vmatprep.mubr.msk.bf16.mxu1 %vm1486_vm1, %v1485_v3  ;;  %v977_v23 = vld [vmem:[#allocation2 + $0x30] sm:$0xff] }
 0xabf   :  { %1398 = vmatprep.subr.bf16.mxu1 %v1485_v3 }
 0xac2   :  { %1399 = vmatpush3.bf16.msra.mxu1 %v1661_v24 }
 0xb90   :  { %v969_v40 = vpop.f32.mrb[32].mxu1 }
 0xb91   :  { %v975_v41 = vadd.f32 %v969_v40, %v930_v39  ;;  %v1386_v42 = vpop.f32.mrb[33].mxu1 }
 0xb92   :  { %v972_v43 = vpop.f32.mrb[34].mxu1 }
 0xb93   :  { %1455 = vtanh.f32 %v975_v41  ;;  %v1387_v44 = vpop.f32.mrb[35].mxu1 }
 0xb9d   :  { %v1456_v45 = vpop.eup %1455 }
 0xb9e   :  { %v978_v46 = vpack.c.bf16 %v1456_v45, %v1456_v45 }
 0xba0   :  { %1393 = vmatmul.mubr.msk.bf16.vlgmr.msra.gmra.mrb[36].mxu0 %vm155_vm2, %v978_v46 }
 0xba1   :  { %1408 = vmatprep.mubr.msk.bf16.mxu0 %vm1486_vm1, %v1485_v3  ;;  %1405 = vmatpush3.bf16.msra.mxu0 %v1427_v52 }
 0xba2   :  { %1406 = vmatprep.subr.bf16.mxu0 %v1485_v3  ;;  %v1188_v3 = vld [vmem:[%s1774_s8] ss:$0 sm:$0xff] }
 0xba5   :  { %1407 = vmatpush3.bf16.msra.mxu0 %v1428_v53 }
 0xc73   :  { %v1016_v47 = vpop.f32.mrb[36].mxu0 }
 0xc74   :  { %v1022_v48 = vadd.f32 %v1016_v47, %v977_v23  ;;  %v1394_v6 = vpop.f32.mrb[37].mxu0 }
 0xc75   :  { %v1019_v49 = vpop.f32.mrb[38].mxu0 }
 0xc76   :  { %1457 = vtanh.f32 %v1022_v48  ;;  %v1395_v24 = vpop.f32.mrb[39].mxu0 }
 0xc80   :  { %v1458_v50 = vpop.eup %1457 }
 0xc81   :  { %v1025_v51 = vpack.c.bf16 %v1458_v50, %v1458_v50 }
 0xc83   :  { %1401 = vmatmul.mubr.msk.bf16.vlgmr.msra.gmra.mrb[36].mxu1 %vm155_vm2, %v1025_v51 }
 0xd56   :  { %v1063_v55 = vpop.f32.mrb[36].mxu1 }
 0xd57   :  { %v1069_v56 = vadd.f32 %v1063_v55, %v1024_v54  ;;  %v1402_v57 = vpop.f32.mrb[37].mxu1 }
 0xd58   :  { %v1066_v58 = vpop.f32.mrb[38].mxu1 }
 0xd59   :  { %1459 = vtanh.f32 %v1069_v56  ;;  %v1403_v59 = vpop.f32.mrb[39].mxu1 }
 0xd63   :  { %v1460_v60 = vpop.eup %1459 }
 0xd64   :  { %v1071_v61 = vpack.c.bf16 %v1460_v60, %v1460_v60 }
 0xd66   :  { %1409 = vmatmul.mubr.msk.bf16.vlgmr.msra.gmra.mrb[40].mxu0 %vm155_vm2, %v1071_v61 }
 0xe39   :  { %v1132_v62 = vpop.f32.mrb[40].mxu0 }
 0xe3a   :  { %v1133_v63 = vadd.f32 %v1188_v3, %v1132_v62  ;;  %v1410_v0 = vpop.f32.mrb[41].mxu0 }
 0xe3b   :  { %v1135_v1 = vpop.f32.mrb[42].mxu0 }
 0xe3c   :  { %1138 = vst [vmem:[#allocation3] sm:$0xff] %v1133_v63  ;;  %v1411_v2 = vpop.f32.mrb[43].mxu0 }
 0xe3d   :  { %1472 = shalt.err (!%p1469_p4)
}
 0xe3e   :  { %s1473_s8 = scalar_lea.hbm %s1775_s9, 128 }
 0xe3f   :  { %p1474_p5 = scmp.ne.s32.totalorder %s1775_s9, %s1473_s8  ;;  %p1477_p6 = scmp.lt.u32.totalorder %s1473_s8, %s1775_s9 }
 0xe41   :  { %p1479_p7 = pnand %p1477_p6, %p1474_p5 }
 0xe43   :  { %1482 = shalt.err (!%p1479_p7)
}
 0xe44   :  { %1148 = dma.vmem_to_hbm [thread:$0]  %s1146_s14, 128, %s1775_s9, [#allocation4]  }
 0xe45   :  { %1483 = dma.done.wait [#allocation4], 128  }
 0xe46   :  { %1484 = vsyncadd [#allocation4], 4294967168 }
 0xe47   :  { %1152 = vsyncpa [#allocation4], 1 }

</bundles_post_ra>
